<compile_context>
chip_gen: v6e
topology: v6e:2x2x1
jax: 0.10.0
libtpu: 0.0.40
codegen_flags: <defaults>
</compile_context>

<pallas_src>
import math

import jax
import jax.numpy as jnp
import numpy as np
from jax.experimental import pallas as pl
from jax.experimental.pallas import tpu as pltpu

OUT_ROWS = 8  # sublane-padded output rows (true output dim is 4)


def mlp_kernel(xT_ref, w1_ref, b1_ref, w2_ref, b2_ref, w3_ref, b3_ref, o_ref):
    # Everything is carried transposed: features on sublanes, batch on lanes.
    x = xT_ref[...]                                               # (16, TB)
    # Layer 1: Linear(16 -> 32) + ReLU.  MXU accumulates in f32.
    h = jnp.dot(w1_ref[...], x, preferred_element_type=jnp.float32)   # (32, TB)
    h = jnp.maximum(h + b1_ref[...], 0.0)
    # Layer 2: Linear(32 -> 32) + Tanh (tanh on EUP, bias add on VPU, all f32).
    h = jnp.dot(w2_ref[...], h.astype(w2_ref.dtype),
                preferred_element_type=jnp.float32)                   # (32, TB)
    h = jnp.tanh(h + b2_ref[...])
    # Layer 3: Linear(32 -> 4), zero-padded to 8 rows, Identity activation.
    o = jnp.dot(w3_ref[...], h.astype(w3_ref.dtype),
                preferred_element_type=jnp.float32)                   # (8, TB)
    o_ref[...] = (o + b3_ref[...]).astype(o_ref.dtype)


def mlp_forward(x, params, *, block_rows=2048,
                compute_dtype=jnp.float32, store_dtype=jnp.bfloat16):
    """x: (B, 16) float32.  params: list of (W in torch (out,in) layout, b (out,))."""
    (w1, b1), (w2, b2), (w3, b3) = params
    B, in_dim = x.shape
    out_dim = w3.shape[0]

    # Weights stay in torch (out, in) layout for the transposed pipeline.
    w1c = w1.astype(compute_dtype)
    w2c = w2.astype(compute_dtype)
    w3p = (jnp.zeros((OUT_ROWS, w3.shape[1]), jnp.float32)
           .at[:out_dim].set(w3).astype(compute_dtype))
    b1c = b1.astype(jnp.float32)[:, None]                 # (32, 1)
    b2c = b2.astype(jnp.float32)[:, None]                 # (32, 1)
    b3p = jnp.zeros((OUT_ROWS, 1), jnp.float32).at[:out_dim, 0].set(b3)

    # Batch tile: lane-aligned (multiple of 128), large by default to amortize
    # per-step overhead; for larger batches keep >= 2 grid steps so the batch
    # axis can span both TensorCores on v7x.
    def rup(a, m):
        return ((a + m - 1) // m) * m

    tb = max(128, (min(block_rows, rup(B, 128)) // 128) * 128)
    if B >= 256:
        tb = min(tb, max(128, rup(pl.cdiv(B, 2), 128)))
    b_pad = rup(B, tb)
    grid = (b_pad // tb,)

    # Single wrapper pass over x: transpose + cast (+ zero pad of the batch
    # lanes) — padded columns are zeros, harmless through ReLU/Tanh.
    xT = x.T.astype(compute_dtype)                        # (16, B)
    if b_pad != B:
        xT = jnp.pad(xT, ((0, 0), (0, b_pad - B)))

    const = lambda arr: pl.BlockSpec(arr.shape, lambda i: (0,) * arr.ndim)

    outT = pl.pallas_call(
        mlp_kernel,
        out_shape=jax.ShapeDtypeStruct((OUT_ROWS, b_pad), store_dtype),
        grid=grid,
        in_specs=[
            pl.BlockSpec((in_dim, tb), lambda i: (0, i)),   # x^T tiled over batch lanes
            const(w1c), const(b1c),                         # params stay VMEM-resident
            const(w2c), const(b2c),
            const(w3p), const(b3p),
        ],
        out_specs=pl.BlockSpec((OUT_ROWS, tb), lambda i: (0, i)),
        compiler_params=pltpu.CompilerParams(
            dimension_semantics=("parallel",)),             # independent batch tiles
    )(xT, w1c, b1c, w2c, b2c, w3p, b3p)

    # Wrapper glue: drop padded rows/lanes, back to (B, 4) f32.
    return outT[:out_dim, :B].T.astype(jnp.float32)


def init_linear(key, in_features, out_features):
    """Deterministic init matching torch.nn.Linear defaults:
    U(-1/sqrt(fan_in), 1/sqrt(fan_in)) for both weight and bias."""
    kw, kb = jax.random.split(key)
    bound = 1.0 / math.sqrt(in_features)
    w = jax.random.uniform(kw, (out_features, in_features), jnp.float32,
                           minval=-bound, maxval=bound)
    b = jax.random.uniform(kb, (out_features,), jnp.float32,
                           minval=-bound, maxval=bound)
    return w, b


def reference_forward(x, params):
    (w1, b1), (w2, b2), (w3, b3) = params
    h = jnp.maximum(x @ w1.T + b1, 0.0)
    h = jnp.tanh(h @ w2.T + b2)
    return h @ w3.T + b3


if __name__ == "__main__":
    # layers_struct = [(16, None), (32, "ReLU"), (32, "Tanh"), (4, None)]
    key = jax.random.PRNGKey(0)
    k_x, k_x2, k1, k2, k3 = jax.random.split(key, 5)

    params = [
        init_linear(k1, 16, 32),
        init_linear(k2, 32, 32),
        init_linear(k3, 32, 4),
    ]

    # Small batch (play() flattens a single 4x4 board -> 16 features).
    batch = 8
    x = jax.random.normal(k_x, (batch, 16), dtype=jnp.float32)
    ref = reference_forward(x, params)

    # f32 compute + f32 store: tight agreement with the torch-semantics reference.
    out_f32 = jax.block_until_ready(
        mlp_forward(x, params, compute_dtype=jnp.float32, store_dtype=jnp.float32))
    assert out_f32.shape == (batch, 4)
    np.testing.assert_allclose(np.asarray(out_f32), np.asarray(ref),
                               rtol=5e-3, atol=5e-3)

    # Default path: f32 compute, bf16 store (output quantization only).
    out_def = jax.block_until_ready(mlp_forward(x, params))
    np.testing.assert_allclose(np.asarray(out_def), np.asarray(ref),
                               rtol=1e-2, atol=1e-2)

    # bf16 matmul-operand path: looser tolerance for activation quantization.
    out_bf16 = jax.block_until_ready(
        mlp_forward(x, params, compute_dtype=jnp.bfloat16))
    np.testing.assert_allclose(np.asarray(out_bf16), np.asarray(ref),
                               rtol=2e-2, atol=2e-2)

    # Exercise the batch-tiled path (grid > 1, non-multiple batch -> padding).
    batch2 = 1000
    x2 = jax.random.normal(k_x2, (batch2, 16), dtype=jnp.float32)
    ref2 = reference_forward(x2, params)
    out2 = jax.block_until_ready(mlp_forward(x2, params))
    assert out2.shape == (batch2, 4)
    np.testing.assert_allclose(np.asarray(out2), np.asarray(ref2),
                               rtol=1e-2, atol=1e-2)

    print("KERNEL_OK")
</pallas_src>

<mosaic_0001>
module attributes {stable_mosaic.version = 11 : i64} {
  func.func @mlp_kernel(%arg0: i32, %arg1: memref<16x128xf32, #tpu.memory_space<vmem>>, %arg2: memref<32x16xf32, #tpu.memory_space<vmem>>, %arg3: memref<32x1xf32, #tpu.memory_space<vmem>>, %arg4: memref<32x32xf32, #tpu.memory_space<vmem>>, %arg5: memref<32x1xf32, #tpu.memory_space<vmem>>, %arg6: memref<8x32xf32, #tpu.memory_space<vmem>>, %arg7: memref<8x1xf32, #tpu.memory_space<vmem>>, %arg8: memref<8x128xf32, #tpu.memory_space<vmem>>) attributes {dimension_semantics = [#tpu.dimension_semantics<parallel>], iteration_bounds = array<i64: 1>, scalar_prefetch = 0 : i64, scratch_operands = 0 : i64, tpu.core_type = #tpu.core_type<tc>, window_params = [{transform_indices = @transform_0, window_bounds = array<i64: 16, 128>}, {pipeline_mode = #tpu.pipeline_mode<synchronous>, transform_indices = @transform_1, window_bounds = array<i64: 32, 16>}, {pipeline_mode = #tpu.pipeline_mode<synchronous>, transform_indices = @transform_2, window_bounds = array<i64: 32, 1>}, {pipeline_mode = #tpu.pipeline_mode<synchronous>, transform_indices = @transform_3, window_bounds = array<i64: 32, 32>}, {pipeline_mode = #tpu.pipeline_mode<synchronous>, transform_indices = @transform_4, window_bounds = array<i64: 32, 1>}, {pipeline_mode = #tpu.pipeline_mode<synchronous>, transform_indices = @transform_5, window_bounds = array<i64: 8, 32>}, {pipeline_mode = #tpu.pipeline_mode<synchronous>, transform_indices = @transform_6, window_bounds = array<i64: 8, 1>}, {transform_indices = @transform_7, window_bounds = array<i64: 8, 128>}]} {
    %c0 = arith.constant 0 : index
    %c0_0 = arith.constant 0 : index
    %0 = vector.load %arg1[%c0, %c0_0] : memref<16x128xf32, #tpu.memory_space<vmem>>, vector<16x128xf32>
    %c0_1 = arith.constant 0 : index
    %c0_2 = arith.constant 0 : index
    %1 = vector.load %arg2[%c0_1, %c0_2] : memref<32x16xf32, #tpu.memory_space<vmem>>, vector<32x16xf32>
    %cst = arith.constant dense<0.000000e+00> : vector<32x128xf32>
    %2 = tpu.matmul %1, %0, %cst {dimension_numbers = #tpu.dot_dimension_numbers<[1], [0], [0], [1], [0, 0, 1, 1], [], []>} : vector<32x16xf32>, vector<16x128xf32>, vector<32x128xf32> -> vector<32x128xf32>
    %c0_3 = arith.constant 0 : index
    %c0_4 = arith.constant 0 : index
    %3 = vector.load %arg3[%c0_3, %c0_4] : memref<32x1xf32, #tpu.memory_space<vmem>>, vector<32x1xf32>
    %4 = vector.broadcast %3 : vector<32x1xf32> to vector<32x128xf32>
    %5 = arith.addf %2, %4 : vector<32x128xf32>
    %cst_5 = arith.constant 0.000000e+00 : f32
    %6 = vector.broadcast %cst_5 : f32 to vector<32x128xf32>
    %7 = arith.maximumf %5, %6 : vector<32x128xf32>
    %c0_6 = arith.constant 0 : index
    %c0_7 = arith.constant 0 : index
    %8 = vector.load %arg4[%c0_6, %c0_7] : memref<32x32xf32, #tpu.memory_space<vmem>>, vector<32x32xf32>
    %cst_8 = arith.constant dense<0.000000e+00> : vector<32x128xf32>
    %9 = tpu.matmul %8, %7, %cst_8 {dimension_numbers = #tpu.dot_dimension_numbers<[1], [0], [0], [1], [0, 0, 1, 1], [], []>} : vector<32x32xf32>, vector<32x128xf32>, vector<32x128xf32> -> vector<32x128xf32>
    %c0_9 = arith.constant 0 : index
    %c0_10 = arith.constant 0 : index
    %10 = vector.load %arg5[%c0_9, %c0_10] : memref<32x1xf32, #tpu.memory_space<vmem>>, vector<32x1xf32>
    %11 = vector.broadcast %10 : vector<32x1xf32> to vector<32x128xf32>
    %12 = arith.addf %9, %11 : vector<32x128xf32>
    %13 = math.tanh %12 : vector<32x128xf32>
    %c0_11 = arith.constant 0 : index
    %c0_12 = arith.constant 0 : index
    %14 = vector.load %arg6[%c0_11, %c0_12] : memref<8x32xf32, #tpu.memory_space<vmem>>, vector<8x32xf32>
    %cst_13 = arith.constant dense<0.000000e+00> : vector<8x128xf32>
    %15 = tpu.matmul %14, %13, %cst_13 {dimension_numbers = #tpu.dot_dimension_numbers<[1], [0], [0], [1], [0, 0, 1, 1], [], []>} : vector<8x32xf32>, vector<32x128xf32>, vector<8x128xf32> -> vector<8x128xf32>
    %c0_14 = arith.constant 0 : index
    %c0_15 = arith.constant 0 : index
    %16 = vector.load %arg7[%c0_14, %c0_15] : memref<8x1xf32, #tpu.memory_space<vmem>>, vector<8x1xf32>
    %17 = vector.broadcast %16 : vector<8x1xf32> to vector<8x128xf32>
    %18 = arith.addf %15, %17 : vector<8x128xf32>
    %c0_16 = arith.constant 0 : index
    %c0_17 = arith.constant 0 : index
    %19 = vector.load %arg8[%c0_16, %c0_17] : memref<8x128xf32, #tpu.memory_space<vmem>>, vector<8x128xf32>
    tpu.vector_store %arg8[%c0_16, %c0_17], %18 {strides = array<i32>} : memref<8x128xf32, #tpu.memory_space<vmem>>, vector<8x128xf32>,
    return
  }
  func.func @transform_0(%arg0: i32) -> (i32, i32) {
    %c0_i32 = arith.constant 0 : i32
    %c0_i32_0 = arith.constant 0 : i32
    return %c0_i32, %arg0 : i32, i32
  }
  func.func @transform_1(%arg0: i32) -> (i32, i32) {
    %c0_i32 = arith.constant 0 : i32
    %c0_i32_0 = arith.constant 0 : i32
    %c0_i32_1 = arith.constant 0 : i32
    return %c0_i32, %c0_i32_0 : i32, i32
  }
  func.func @transform_2(%arg0: i32) -> (i32, i32) {
    %c0_i32 = arith.constant 0 : i32
    %c0_i32_0 = arith.constant 0 : i32
    %c0_i32_1 = arith.constant 0 : i32
    return %c0_i32, %c0_i32_0 : i32, i32
  }
  func.func @transform_3(%arg0: i32) -> (i32, i32) {
    %c0_i32 = arith.constant 0 : i32
    %c0_i32_0 = arith.constant 0 : i32
    %c0_i32_1 = arith.constant 0 : i32
    return %c0_i32, %c0_i32_0 : i32, i32
  }
  func.func @transform_4(%arg0: i32) -> (i32, i32) {
    %c0_i32 = arith.constant 0 : i32
    %c0_i32_0 = arith.constant 0 : i32
    %c0_i32_1 = arith.constant 0 : i32
    return %c0_i32, %c0_i32_0 : i32, i32
  }
  func.func @transform_5(%arg0: i32) -> (i32, i32) {
    %c0_i32 = arith.constant 0 : i32
    %c0_i32_0 = arith.constant 0 : i32
    %c0_i32_1 = arith.constant 0 : i32
    return %c0_i32, %c0_i32_0 : i32, i32
  }
  func.func @transform_6(%arg0: i32) -> (i32, i32) {
    %c0_i32 = arith.constant 0 : i32
    %c0_i32_0 = arith.constant 0 : i32
    %c0_i32_1 = arith.constant 0 : i32
    return %c0_i32, %c0_i32_0 : i32, i32
  }
  func.func @transform_7(%arg0: i32) -> (i32, i32) {
    %c0_i32 = arith.constant 0 : i32
    %c0_i32_0 = arith.constant 0 : i32
    return %c0_i32, %arg0 : i32, i32
  }
}

</mosaic_0001>

<bundles_post_ra>
// kernel: tpu_custom_call.1
= control target key start
LH: loop header
LB: loop body
LE: loop exit
PB: predicated region body
PF: predicated region fallthrough
CT: control target
= control target key end

     0   :  { %vm57_vm0 = vcmask 130048   ;;  %v483_v4 = vmov 0   ;;  %s599_s0 = inlined_call_operand.vmem [shape: f32[16,128], index: 0, kind: input, shape index: {}]   ;;  %s600_s1 = inlined_call_operand.vmem [shape: f32[32,16], index: 1, kind: input, shape index: {}]   ;;  %s601_s2 = inlined_call_operand.vmem [shape: f32[32,1], index: 2, kind: input, shape index: {}]   ;;  %s602_s3 = inlined_call_operand.vmem [shape: f32[32,32], index: 3, kind: input, shape index: {}]   ;;  %s603_s4 = inlined_call_operand.vmem [shape: f32[32,1], index: 4, kind: input, shape index: {}]   ;;  %s604_s5 = inlined_call_operand.vmem [shape: f32[8,32], index: 5, kind: input, shape index: {}]   ;;  %s605_s6 = inlined_call_operand.vmem [shape: f32[8,1], index: 6, kind: input, shape index: {}]   ;;  %s606_s7 = inlined_call_operand.hbm [shape: f32[8,128], index: 7, kind: output, shape index: {}]  }
   0x1   :  { %v28_v0 = vld [vmem:[%s599_s0 + $0x8] sm:$0xff]  ;;  %v27_v1 = vld [vmem:[%s599_s0] sm:$0xff]  ;;  %451 = vset.pattern.permute.xlu0 %v483_v4  ;;  %v36_v5 = vld [vmem:[%s601_s2 + $0x18] sm:$0xff]  ;;  %452 = vset.pattern.permute.xlu1 %v483_v4 }
   0x2   :  { %v29_v2 = vld [vmem:[%s600_s1] sm:$0xff]  ;;  %412 = vmatprep.subr.mxu0 %v28_v0  ;;  %v30_v3 = vld [vmem:[%s600_s1 + $0x8] sm:$0xff]  ;;  %v31_v6 = vld [vmem:[%s600_s1 + $0x10] sm:$0xff]  ;;  %54 = vperm.xlu0 %451, %v36_v5  }
   0x3   :  { %416 = vmatprep.mubr.msk.f32.mxu0 %vm57_vm0, %v29_v2  ;;  %413 = vmatpush3.msra.mxu0 %v28_v0  ;;  %v34_v7 = vld [vmem:[%s601_s2 + $0x8] sm:$0xff]  ;;  %v35_v8 = vld [vmem:[%s601_s2 + $0x10] sm:$0xff] }
   0x4   :  { %414 = vmatprep.subr.mxu0 %v27_v1  ;;  %44 = vperm.xlu1 %452, %v34_v7  }
   0x5   :  { %415 = vmatpush3.msra.mxu0 %v27_v1 }
   0x6   :  { %417 = vmatmul.mubr.msk.f32.vlgmr.msra.gmra.mxu0 %vm57_vm0, %v30_v3 }
   0x7   :  { %12 = vsyncpa [#allocation3], 0  ;;  %419 = vmatprep.mubr.msk.f32.mxu0 %vm57_vm0, %v31_v6  ;;  %v32_v9 = vld [vmem:[%s600_s1 + $0x18] sm:$0xff]  ;;  %v33_v10 = vld [vmem:[%s601_s2] sm:$0xff]  ;;  %49 = vperm.xlu0 %451, %v35_v8   ;;  %vm187_vm1 = vcmask 261120   ;;  %v484_v36 = vmov 0.0  }
   0x8   :  { %v166_v11 = vld [vmem:[%s603_s4 + $0x18] sm:$0xff]  ;;  %39 = vperm.xlu1 %452, %v33_v10   ;;  %v165_v12 = vld [vmem:[%s603_s4 + $0x10] sm:$0xff]  ;;  %v164_v13 = vld [vmem:[%s603_s4 + $0x8] sm:$0xff]  ;;  %436 = vmatprep.subr.mxu0 %v484_v36  ;;  %vm485_vm2 = vmmov 0   ;;  %s486_s11 = smov [#allocation2]  }
   0x9   :  { %v163_v14 = vld [vmem:[%s603_s4] sm:$0xff]  ;;  %v160_v33 = vld [vmem:[%s602_s3 + $0x8] sm:$0xff]  ;;  %v161_v34 = vld [vmem:[%s602_s3 + $0x10] sm:$0xff]  ;;  %s376_s12 = sshll.u32 %s486_s11, 4  ;;  %s377_s12 = int_to_ptr.vmem [resolvable:$true] %s376_s12 }
   0xa   :  { %420 = vmatmul.mubr.msk.f32.gmra.mxu0 %vm57_vm0, %v32_v9  ;;  %v290_v15 = vld [vmem:[%s605_s6] sm:$0xff]  ;;  %v162_v35 = vld [vmem:[%s602_s3 + $0x18] sm:$0xff]  ;;  %s461_s13 = scalar_lea.vmem %s377_s12, 128  ;;  %p466_p1 = scmp.lt.s32.totalorder %s377_s12, %s377_s12 }
   0xb   :  { %184 = vperm.xlu0 %451, %v166_v11   ;;  %v159_v16 = vld [vmem:[%s602_s3] sm:$0xff]  ;;  %444 = vmatprep.mubr.msk.f32.mxu0 %vm485_vm2, %v484_v36  ;;  %p462_p0 = scmp.ne.s32.totalorder %s377_s12, %s461_s13  ;;  %p467_p2 = scmp.lt.s32.totalorder %s461_s13, %s461_s13 }
   0xc   :  { %179 = vperm.xlu1 %452, %v165_v12   ;;  %430 = vmatprep.mubr.msk.f32.mxu1 %vm187_vm1, %v159_v16  ;;  %v289_v52 = vld [vmem:[%s604_s5] sm:$0xff] }
   0xd   :  { %p468_p3 = por %p467_p2, %p466_p1 }
   0xf   :  { %174 = vperm.xlu0 %451, %v164_v13   ;;  %p469_p4 = pnand %p468_p3, %p462_p0 }
  0x10   :  { %169 = vperm.xlu1 %452, %v163_v14  }
  0x13   :  { %293 = vperm.xlu0 %451, %v290_v15  }
  0x7d   :  { %v55_v17 = vpop.permute.xlu0 %54 }
  0x7f   :  { %v45_v19 = vpop.permute.xlu1 %44 }
  0x82   :  { %v50_v23 = vpop.permute.xlu0 %49 }
  0x83   :  { %v40_v28 = vpop.permute.xlu1 %39 }
  0x86   :  { %v185_v37 = vpop.permute.xlu0 %184 }
  0x87   :  { %v180_v39 = vpop.permute.xlu1 %179 }
  0x8a   :  { %v175_v43 = vpop.permute.xlu0 %174 }
  0x8b   :  { %v170_v47 = vpop.permute.xlu1 %169 }
  0x8e   :  { %v294_v54 = vpop.permute.xlu0 %293 }
  0xc6   :  { %v418_v18 = vpop.f32.mrf.mxu0 }
  0xc7   :  { %v142_v25 = vadd.f32 %v418_v18, %v45_v19 }
  0xc8   :  { %v136_v20 = vpop.f32.mrf.mxu0 }
  0xc9   :  { %v137_v29 = vadd.f32 %v136_v20, %v40_v28  ;;  %v156_v31 = vmax.f32 %v142_v25, 0.0 }
  0xca   :  { %v421_v21 = vpop.f32.mrf.mxu0 }
  0xcb   :  { %v152_v22 = vadd.f32 %v421_v21, %v55_v17  ;;  %v155_v32 = vmax.f32 %v137_v29, 0.0 }
  0xcc   :  { %v146_v24 = vpop.f32.mrf.mxu0 }
  0xcd   :  { %v158_v26 = vmax.f32 %v152_v22, 0.0  ;;  %v147_v27 = vadd.f32 %v146_v24, %v50_v23 }
  0xcf   :  { %v157_v30 = vmax.f32 %v147_v27, 0.0  ;;  %422 = vmatprep.subr.mxu1 %v158_v26 }
  0xd0   :  { %423 = vmatpush3.msra.mxu1 %v158_v26 }
  0xd1   :  { %424 = vmatprep.subr.mxu1 %v157_v30 }
  0xd2   :  { %425 = vmatpush3.msra.mxu1 %v157_v30 }
  0xd3   :  { %426 = vmatprep.subr.mxu1 %v156_v31 }
  0xd4   :  { %427 = vmatpush3.msra.mxu1 %v156_v31 }
  0xd5   :  { %428 = vmatprep.subr.mxu1 %v155_v32 }
  0xd6   :  { %429 = vmatpush3.msra.mxu1 %v155_v32 }
  0xd7   :  { %431 = vmatmul.mubr.msk.f32.vlgmr.msra.gmra.mxu1 %vm187_vm1, %v160_v33 }
  0xd8   :  { %433 = vmatprep.mubr.msk.f32.mxu1 %vm187_vm1, %v161_v34 }
  0xdb   :  { %434 = vmatmul.mubr.msk.f32.gmra.mxu1 %vm187_vm1, %v162_v35 }
 0x197   :  { %v432_v38 = vpop.f32.mrf.mxu1 }
 0x198   :  { %v272_v45 = vadd.f32 %v432_v38, %v175_v43 }
 0x199   :  { %v266_v40 = vpop.f32.mrf.mxu1 }
 0x19a   :  { %v267_v48 = vadd.f32 %v266_v40, %v170_v47 }
 0x19b   :  { %v435_v41 = vpop.f32.mrf.mxu1 }
 0x19c   :  { %v282_v42 = vadd.f32 %v435_v41, %v185_v37 }
 0x19d   :  { %v276_v44 = vpop.f32.mrf.mxu1 }
 0x19e   :  { %453 = vtanh.f32 %v282_v42  ;;  %v277_v46 = vadd.f32 %v276_v44, %v180_v39 }
 0x1a0   :  { %455 = vtanh.f32 %v277_v46 }
 0x1a1   :  { %457 = vtanh.f32 %v272_v45 }
 0x1a2   :  { %459 = vtanh.f32 %v267_v48 }
 0x1ab   :  { %v454_v49 = vpop.eup %453 }
 0x1ac   :  { %437 = vmatpush3.msra.mxu0 %v454_v49 }
 0x1ad   :  { %v456_v50 = vpop.eup %455  ;;  %438 = vmatprep.subr.mxu0 %v484_v36 }
 0x1ae   :  { %439 = vmatpush3.msra.mxu0 %v456_v50  ;;  %v458_v51 = vpop.eup %457 }
 0x1af   :  { %440 = vmatprep.subr.mxu0 %v484_v36  ;;  %v460_v53 = vpop.eup %459 }
 0x1b0   :  { %441 = vmatpush3.msra.mxu0 %v458_v51 }
 0x1b1   :  { %442 = vmatprep.subr.mxu0 %v484_v36 }
 0x1b2   :  { %443 = vmatpush3.msra.mxu0 %v460_v53 }
 0x1b3   :  { %445 = vmatmul.mubr.msk.f32.vlgmr.msra.gmra.mxu0 %vm187_vm1, %v289_v52 }
 0x273   :  { %v365_v55 = vpop.f32.mrf.mxu0 }
 0x274   :  { %v366_v56 = vadd.f32 %v365_v55, %v294_v54 }
 0x275   :  { %v446_v57 = vpop.f32.mrf.mxu0 }
 0x276   :  { %369 = vst [vmem:[#allocation2] sm:$0xff] %v366_v56 }
 0x277   :  { %472 = shalt.err (!%p469_p4)
}
 0x278   :  { %379 = dma.vmem_to_hbm [thread:$0]  %s377_s12, 128, %s606_s7, [#allocation3]  }
 0x279   :  { %481 = dma.done.wait [#allocation3], 128  }
 0x27a   :  { %482 = vsyncadd [#allocation3], 4294967168 }
 0x27b   :  { %383 = vsyncpa [#allocation3], 1 }

</bundles_post_ra>
